<compile_context>
chip_gen: v7x
topology: tpu7x:2x2x1
jax: 0.10.0
libtpu: 0.0.40
codegen_flags: <defaults>
</compile_context>

<pallas_src>
import functools

import jax
import jax.numpy as jnp
from jax.experimental import pallas as pl
from jax.experimental.pallas import tpu as pltpu


def _round_up(x, m):
    return (x + m - 1) // m * m


# Cap the scoped-VMEM request at v7x's physical 64 MiB so one setting is safe on
# all generations; on v5e/v6e (128 MiB physical) this can be raised for large H.
_VMEM_LIMIT_CAP = 64 * 1024 * 1024


def _vmem_limit(nbytes):
    return int(min(max(nbytes * 3 // 2 + (4 << 20), 32 << 20), _VMEM_LIMIT_CAP))


# ---------------------------------------------------------------------------
# Phase 1: input projection  xg[t] = x[t] @ W_ih^T + (b_ih + b_hh)
# One (rows, D_in) x (D_in, 4*Hp) MXU matmul per grid step, parallel over time.
# ---------------------------------------------------------------------------
def _input_proj_kernel(x_ref, w_ref, b_ref, xg_ref):
    xg_ref[...] = (jnp.dot(x_ref[...], w_ref[...],
                           preferred_element_type=jnp.float32) + b_ref[...])


def _input_projection(x2, w_ih_p, b_p, *, rows_per_block):
    """x2: (Tp*Bp, D_in); w_ih_p: (D_in, 4*Hp); b_p: (1, 4*Hp) -> (Tp*Bp, 4*Hp) f32."""
    TB, D_in = x2.shape
    Gp = w_ih_p.shape[1]
    n_blocks = TB // rows_per_block
    isz = jnp.dtype(x2.dtype).itemsize
    est = (2 * rows_per_block * D_in * isz + 2 * D_in * Gp * isz
           + 2 * Gp * 4 + 2 * rows_per_block * Gp * 4)
    return pl.pallas_call(
        _input_proj_kernel,
        out_shape=jax.ShapeDtypeStruct((TB, Gp), jnp.float32),
        grid_spec=pltpu.PrefetchScalarGridSpec(
            num_scalar_prefetch=0,
            grid=(n_blocks,),
            in_specs=[
                pl.BlockSpec((rows_per_block, D_in), lambda t: (t, 0)),
                pl.BlockSpec((D_in, Gp), lambda t: (0, 0)),
                pl.BlockSpec((1, Gp), lambda t: (0, 0)),
            ],
            out_specs=pl.BlockSpec((rows_per_block, Gp), lambda t: (t, 0)),
        ),
        compiler_params=pltpu.CompilerParams(
            dimension_semantics=("parallel",),
            vmem_limit_bytes=_vmem_limit(est),
        ),
    )(x2, w_ih_p, b_p)


# ---------------------------------------------------------------------------
# Phase 2: sequential recurrence — only h @ W_hh^T per timestep.
# ---------------------------------------------------------------------------
def _lstm_recurrence_kernel(xg_ref, h0_ref, c0_ref, whh_ref, y_ref, cT_ref,
                            h_sc, c_sc, *, h_pad, tc, t_total, mxu_dtype, unroll):
    """One grid step = `tc` timesteps.

    xg_ref : (tc, Bp, 4*Hp) precomputed x gates (+bias), f32
    whh_ref: (Hp, 4*Hp)     gate-column-padded W_hh^T (mxu_dtype)
    y_ref  : (tc, Bp, Hp)   stacked hidden states for this time block
    cT_ref : (Bp, Hp)       final cell state (written on last grid step only)
    h_sc/c_sc: (Bp, Hp)     f32 carries persisted across grid steps
    """
    t = pl.program_id(0)

    @pl.when(t == 0)
    def _():
        h_sc[...] = h0_ref[...]
        c_sc[...] = c0_ref[...]

    has_tail = (t_total % tc) != 0

    def step(s, carry):
        h, c = carry
        # Only the truly sequential work stays on the critical path:
        # gates = xg[t*tc + s] + h @ W_hh^T (f32 accumulation).
        gates = xg_ref[s] + jnp.dot(h.astype(mxu_dtype), whh_ref[...],
                                    preferred_element_type=jnp.float32)
        # sigmoid(x) = 0.5*tanh(0.5*x) + 0.5  -> one EUP push per gate instead
        # of exp + reciprocal.  Gate slices are full 128-lane-aligned blocks.
        i_g = 0.5 * jnp.tanh(0.5 * gates[:, 0 * h_pad:1 * h_pad]) + 0.5
        f_g = 0.5 * jnp.tanh(0.5 * gates[:, 1 * h_pad:2 * h_pad]) + 0.5
        g_g = jnp.tanh(gates[:, 2 * h_pad:3 * h_pad])
        o_g = 0.5 * jnp.tanh(0.5 * gates[:, 3 * h_pad:4 * h_pad]) + 0.5

        c_new = f_g * c + i_g * g_g          # f32 elementwise path
        h_new = o_g * jnp.tanh(c_new)

        if has_tail:
            # Tail block of a non-divisible T: freeze the carries past T.
            valid = (t * tc + s) < t_total
            h_new = jnp.where(valid, h_new, h)
            c_new = jnp.where(valid, c_new, c)

        y_ref[s] = h_new.astype(y_ref.dtype)
        return (h_new, c_new)

    # h/c are carried in vregs across the unrolled steps; no per-step VMEM
    # round-trip on the recurrent dependency chain.
    h_f, c_f = jax.lax.fori_loop(0, tc, step, (h_sc[...], c_sc[...]),
                                 unroll=unroll)

    # Spill the carries to persistent scratch once per grid step.
    h_sc[...] = h_f
    c_sc[...] = c_f

    @pl.when(t == pl.num_programs(0) - 1)
    def _():
        cT_ref[...] = c_f.astype(cT_ref.dtype)


def lstm_layer(x, h0, c0, w_ih, w_hh, b_ih, b_hh, *,
               time_block=8, mxu_dtype=jnp.float32, y_dtype=None):
    """x: (T, B, D_in); h0, c0: (B, H); w_ih: (4H, D_in); w_hh: (4H, H); b_*: (4H,).

    Returns (y, (h_T, c_T)) with y: (T, B, H), matching the PyTorch LSTMLayer.
    mxu_dtype=jnp.bfloat16 runs both matmuls on the bf16 MXU path with f32
    accumulation; h/c carries and all gate nonlinearities stay f32.
    y_dtype (default x.dtype) may be set to bfloat16 to halve the y writeback.
    """
    T, B, D_in = x.shape
    H = h0.shape[-1]
    y_dtype = x.dtype if y_dtype is None else y_dtype

    Bp = _round_up(B, 8)        # sublane alignment
    Hp = _round_up(H, 128)      # lane-dense gates / hidden states
    Gp = 4 * Hp

    # Time blocking: grid = cdiv(T, tc); the tail block is masked in-kernel.
    tc = max(1, min(time_block, T))
    nT = pl.cdiv(T, tc)
    Tp = nT * tc

    # --- Pad / cast inputs.  Zero padding keeps padded lanes exactly zero in
    # the recurrence: padded gate columns have zero weights & bias, so padded
    # h/c lanes stay 0 for all t (sigmoid(0)=0.5 times a zero c stays zero). ---
    xp = jnp.zeros((Tp, Bp, D_in), mxu_dtype).at[:T, :B, :].set(x.astype(mxu_dtype))
    h0p = jnp.zeros((Bp, Hp), jnp.float32).at[:B, :H].set(h0.astype(jnp.float32))
    c0p = jnp.zeros((Bp, Hp), jnp.float32).at[:B, :H].set(c0.astype(jnp.float32))

    # --- Gate-column-padded weights: each gate's H columns sit at a 128-aligned
    # Hp-wide slot.  Bias pre-summed and folded into the x-projection. ---
    wih_t = jnp.transpose(w_ih).astype(jnp.float32)   # (D_in, 4H)
    whh_t = jnp.transpose(w_hh).astype(jnp.float32)   # (H, 4H)
    bias = (b_ih + b_hh).astype(jnp.float32)          # (4H,)

    Wih = jnp.zeros((D_in, Gp), jnp.float32)
    Whh = jnp.zeros((Hp, Gp), jnp.float32)
    bp = jnp.zeros((1, Gp), jnp.float32)
    for g in range(4):
        Wih = Wih.at[:, g * Hp:g * Hp + H].set(wih_t[:, g * H:(g + 1) * H])
        Whh = Whh.at[:H, g * Hp:g * Hp + H].set(whh_t[:, g * H:(g + 1) * H])
        bp = bp.at[0, g * Hp:g * Hp + H].set(bias[g * H:(g + 1) * H])
    Wih = Wih.astype(mxu_dtype)
    Whh = Whh.astype(mxu_dtype)
    # TODO(synk): int8 weights would halve W VMEM/DMA again on v5e/v6e (native
    # int MXU); do not port that path to v7x (fp8-only MXU).

    # Phase 1: x projection (+ bias) hoisted out of the recurrence.
    xg2 = _input_projection(xp.reshape(Tp * Bp, D_in), Wih, bp,
                            rows_per_block=tc * Bp)
    xg = xg2.reshape(Tp, Bp, Gp)                       # (Tp, Bp, 4*Hp) f32

    # Phase 2: sequential recurrence.
    # Cap the unroll once the live (Bp, 4*Hp) f32 gate tile becomes a large
    # fraction of the 64 x 4 KiB register file (avoid vreg spills).
    unroll = True if Bp * Gp * 4 <= 64 * 1024 else 4

    w_isz = jnp.dtype(mxu_dtype).itemsize
    y_isz = jnp.dtype(y_dtype).itemsize
    est = (2 * tc * Bp * Gp * 4            # xg blocks (double-buffered)
           + 2 * tc * Bp * Hp * y_isz      # y blocks
           + 2 * Hp * Gp * w_isz           # W_hh^T
           + 2 * 2 * Bp * Hp * 4           # h0, c0
           + 2 * Bp * Hp * 4               # c_T output
           + 2 * Bp * Hp * 4)              # scratch carries

    kernel = functools.partial(
        _lstm_recurrence_kernel,
        h_pad=Hp, tc=tc, t_total=T, mxu_dtype=mxu_dtype, unroll=unroll)

    # TODO(synk): for very large H on v7x (64 MiB VMEM), mark W_hh/h0/c0 specs
    # pipeline_mode=pl.Buffered(1), tile the 4*Hp gate axis so only a gate-column
    # slab of W_hh is resident per step, and add a batch grid axis marked
    # "parallel" (or pl.core_map over the 2-core mesh) to use both TensorCores
    # when B >= 16.
    grid_spec = pltpu.PrefetchScalarGridSpec(
        num_scalar_prefetch=0,
        grid=(nT,),
        in_specs=[
            pl.BlockSpec((tc, Bp, Gp), lambda t: (t, 0, 0)),   # xg time block
            pl.BlockSpec((Bp, Hp), lambda t: (0, 0)),          # h0
            pl.BlockSpec((Bp, Hp), lambda t: (0, 0)),          # c0
            pl.BlockSpec((Hp, Gp), lambda t: (0, 0)),          # W_hh^T
        ],
        out_specs=[
            pl.BlockSpec((tc, Bp, Hp), lambda t: (t, 0, 0)),   # y time block
            pl.BlockSpec((Bp, Hp), lambda t: (0, 0)),          # c_T
        ],
        scratch_shapes=[
            pltpu.VMEM((Bp, Hp), jnp.float32),   # h carry across grid steps
            pltpu.VMEM((Bp, Hp), jnp.float32),   # c carry across grid steps
        ],
    )

    y_p, cT_p = pl.pallas_call(
        kernel,
        out_shape=(
            jax.ShapeDtypeStruct((Tp, Bp, Hp), y_dtype),
            jax.ShapeDtypeStruct((Bp, Hp), jnp.float32),
        ),
        grid_spec=grid_spec,
        compiler_params=pltpu.CompilerParams(
            dimension_semantics=("arbitrary",),   # sequential recurrence over time blocks
            vmem_limit_bytes=_vmem_limit(est),
        ),
    )(xg, h0p, c0p, Whh)

    y = y_p[:T, :B, :H]
    hT = y[-1]
    cT = cT_p[:B, :H].astype(c0.dtype)
    return y, (hT, cT)


def lstm_layer_ref(x, h0, c0, w_ih, w_hh, b_ih, b_hh):
    """Pure-JAX reference mirroring the PyTorch LSTMLayer/LSTMCell semantics."""
    H = h0.shape[-1]

    def step(carry, x_t):
        h, c = carry
        gates = x_t @ w_ih.T + b_ih + h @ w_hh.T + b_hh
        i_g = jax.nn.sigmoid(gates[:, 0 * H:1 * H])
        f_g = jax.nn.sigmoid(gates[:, 1 * H:2 * H])
        g_g = jnp.tanh(gates[:, 2 * H:3 * H])
        o_g = jax.nn.sigmoid(gates[:, 3 * H:4 * H])
        c_new = f_g * c + i_g * g_g
        h_new = o_g * jnp.tanh(c_new)
        return (h_new, c_new), h_new

    (hT, cT), ys = jax.lax.scan(step, (h0, c0), x)
    return ys, (hT, cT)


if __name__ == "__main__":
    def _run_case(name, T, B, D_in, H, mxu_dtype, atol, rtol, time_block=8):
        key = jax.random.PRNGKey(0)
        kx, kh, kc, kwi, kwh, kbi, kbh = jax.random.split(key, 7)
        x = jax.random.normal(kx, (T, B, D_in), dtype=jnp.float32)
        h0 = jax.random.normal(kh, (B, H), dtype=jnp.float32)
        c0 = jax.random.normal(kc, (B, H), dtype=jnp.float32)
        # Parameter shapes per torch LSTMCell: (4H, D_in), (4H, H), (4H,)
        w_ih = jax.random.normal(kwi, (4 * H, D_in), dtype=jnp.float32) * 0.1
        w_hh = jax.random.normal(kwh, (4 * H, H), dtype=jnp.float32) * 0.1
        b_ih = jax.random.normal(kbi, (4 * H,), dtype=jnp.float32) * 0.1
        b_hh = jax.random.normal(kbh, (4 * H,), dtype=jnp.float32) * 0.1

        y_ref, (hT_ref, cT_ref) = lstm_layer_ref(x, h0, c0, w_ih, w_hh, b_ih, b_hh)
        y, (hT, cT) = lstm_layer(x, h0, c0, w_ih, w_hh, b_ih, b_hh,
                                 time_block=time_block, mxu_dtype=mxu_dtype)
        jax.block_until_ready((y, hT, cT))
        assert jnp.allclose(y, y_ref, atol=atol, rtol=rtol), f"[{name}] stacked outputs mismatch"
        assert jnp.allclose(hT, hT_ref, atol=atol, rtol=rtol), f"[{name}] final h mismatch"
        assert jnp.allclose(cT, cT_ref, atol=atol, rtol=rtol), f"[{name}] final c mismatch"

    # f32 MXU path, T divisible by the time block.
    _run_case("f32", T=16, B=8, D_in=32, H=32,
              mxu_dtype=jnp.float32, atol=2e-4, rtol=2e-4)
    # Tail path: prime T (grid = cdiv(T, tc) with masked tail), ragged B / H.
    _run_case("tail", T=13, B=4, D_in=32, H=48,
              mxu_dtype=jnp.float32, atol=2e-4, rtol=2e-4)
    # bf16 MXU path (f32 accumulation, f32 carries): looser tolerance, expected.
    _run_case("bf16", T=16, B=8, D_in=32, H=32,
              mxu_dtype=jnp.bfloat16, atol=1e-1, rtol=1e-1)

    print("KERNEL_OK")
</pallas_src>

<mosaic_0001>
module attributes {stable_mosaic.version = 11 : i64} {
  func.func @_input_proj_kernel(%arg0: i32, %arg1: memref<64x32xf32, #tpu.memory_space<vmem>>, %arg2: memref<32x512xf32, #tpu.memory_space<vmem>>, %arg3: memref<1x512xf32, #tpu.memory_space<vmem>>, %arg4: memref<64x512xf32, #tpu.memory_space<vmem>>) attributes {dimension_semantics = [#tpu.dimension_semantics<parallel>], iteration_bounds = array<i64: 2>, scalar_prefetch = 0 : i64, scratch_operands = 0 : i64, tpu.core_type = #tpu.core_type<tc>, window_params = [{transform_indices = @transform_0, window_bounds = array<i64: 64, 32>}, {pipeline_mode = #tpu.pipeline_mode<synchronous>, transform_indices = @transform_1, window_bounds = array<i64: 32, 512>}, {pipeline_mode = #tpu.pipeline_mode<synchronous>, transform_indices = @transform_2, window_bounds = array<i64: 1, 512>}, {transform_indices = @transform_3, window_bounds = array<i64: 64, 512>}]} {
    %c0 = arith.constant 0 : index
    %c0_0 = arith.constant 0 : index
    %0 = vector.load %arg1[%c0, %c0_0] : memref<64x32xf32, #tpu.memory_space<vmem>>, vector<64x32xf32>
    %c0_1 = arith.constant 0 : index
    %c0_2 = arith.constant 0 : index
    %1 = vector.load %arg2[%c0_1, %c0_2] : memref<32x512xf32, #tpu.memory_space<vmem>>, vector<32x512xf32>
    %cst = arith.constant dense<0.000000e+00> : vector<64x512xf32>
    %2 = tpu.matmul %0, %1, %cst {dimension_numbers = #tpu.dot_dimension_numbers<[1], [0], [0], [1], [0, 0, 1, 1], [], []>} : vector<64x32xf32>, vector<32x512xf32>, vector<64x512xf32> -> vector<64x512xf32>
    %c0_3 = arith.constant 0 : index
    %c0_4 = arith.constant 0 : index
    %3 = vector.load %arg3[%c0_3, %c0_4] : memref<1x512xf32, #tpu.memory_space<vmem>>, vector<1x512xf32>
    %4 = vector.broadcast %3 : vector<1x512xf32> to vector<64x512xf32>
    %5 = arith.addf %2, %4 : vector<64x512xf32>
    %c0_5 = arith.constant 0 : index
    %c0_6 = arith.constant 0 : index
    %6 = vector.load %arg4[%c0_5, %c0_6] : memref<64x512xf32, #tpu.memory_space<vmem>>, vector<64x512xf32>
    tpu.vector_store %arg4[%c0_5, %c0_6], %5 {strides = array<i32>} : memref<64x512xf32, #tpu.memory_space<vmem>>, vector<64x512xf32>,
    return
  }
  func.func @transform_0(%arg0: i32) -> (i32, i32) {
    %c0_i32 = arith.constant 0 : i32
    %c0_i32_0 = arith.constant 0 : i32
    return %arg0, %c0_i32 : i32, i32
  }
  func.func @transform_1(%arg0: i32) -> (i32, i32) {
    %c0_i32 = arith.constant 0 : i32
    %c0_i32_0 = arith.constant 0 : i32
    %c0_i32_1 = arith.constant 0 : i32
    return %c0_i32, %c0_i32_0 : i32, i32
  }
  func.func @transform_2(%arg0: i32) -> (i32, i32) {
    %c0_i32 = arith.constant 0 : i32
    %c0_i32_0 = arith.constant 0 : i32
    %c0_i32_1 = arith.constant 0 : i32
    return %c0_i32, %c0_i32_0 : i32, i32
  }
  func.func @transform_3(%arg0: i32) -> (i32, i32) {
    %c0_i32 = arith.constant 0 : i32
    %c0_i32_0 = arith.constant 0 : i32
    return %arg0, %c0_i32 : i32, i32
  }
}

</mosaic_0001>

<bundles_post_ra>
// kernel: tpu_custom_call.1
= control target key start
LH: loop header
LB: loop body
LE: loop exit
PB: predicated region body
PF: predicated region fallthrough
CT: control target
= control target key end

     0   :  { %8 = vsyncpa [#allocation3], 0  ;;  %s1029_s0 = inlined_call_operand.vmem [shape: f32[128,32], index: 0, kind: input, shape index: {}]   ;;  %s1030_s1 = inlined_call_operand.vmem [shape: f32[32,512], index: 1, kind: input, shape index: {}]   ;;  %s1031_s2 = inlined_call_operand.vmem [shape: f32[1,512], index: 2, kind: input, shape index: {}]   ;;  %s1032_s3 = inlined_call_operand.hbm [shape: f32[128,512], index: 3, kind: output, shape index: {}]  }
   0x1   :  { %10 = vsyncpa [#allocation3 + $0x1], 0  ;;  %s755_s12 = smov 0   ;;  %s757_s13 = smov 0  }
   0x2   :  { %s759_s14 = smov 0   ;;  %s761_s15 = smov 0  }
   0x3 LB: > { %s776_s16 = sadd.s32 4294967295, %s729_s15   ;;  %s578_s17 = sadd.s32 4294967294, %s729_s15   ;;  %s729_s15 = sphi %s761_s15, %s1038_s15   ;;  %s725_s14 = sphi %s759_s14, %s1037_s14   ;;  %s721_s13 = sphi %s757_s13, %s1036_s13   ;;  %s717_s12 = sphi %s755_s12, %s1035_s12  }
   0x4   : > { %s780_s18 = sadd.s32 1, %s729_s15   ;;  %s91_s19 = sadd.s32 1, %s725_s14 }
   0x5   : > { %s88_s20 = ssub.s32 %s729_s15, %s780_s18  ;;  %p101_p0 = scmp.ne.s32.totalorder %s725_s14, %s721_s13 }
   0x6   : > { %p89_p1 = scmp.eq.s32.totalorder %s88_s20, 0  ;;  %p102_p2 = scmp.eq.s32.totalorder %s776_s16, 1 }
   0x7   : > { %p107_p3 = scmp.ne.s32.totalorder %s721_s13, %s717_s12  ;;  %p108_p4 = scmp.eq.s32.totalorder %s578_s17, 1 }
   0x8   : > { %s791_s21 = scalar_select %p89_p1, %s725_s14, %s91_s19  }
   0x9   : > { %p793_p5 = por %p102_p2, %p101_p0  ;;  %p797_p6 = por %p108_p4, %p107_p3 }
   0xa   : > { %p581_p7 = scmp.ge.s32.totalorder %s729_s15, 1  ;;  %p141_p8 = scmp.lt.s32.totalorder %s729_s15, 3 }
   0xc   : > { %p142_p9 = pnand %p581_p7, %p141_p8 }
   0xd   : > { %v181_v0 = vld [vmem:[%s1030_s1 + $0x8] sm:$0xff] (!%p142_p9)  ;;  %v183_v2 = vld [vmem:[%s1030_s1 + $0x18] sm:$0xff] (!%p142_p9)  ;;  %s583_s30 = sshll.u32 (!%p142_p9), %s776_s16, 3  ;;  %v180_v5 = vld [vmem:[%s1030_s1] sm:$0xff] (!%p142_p9)  ;;  %v731_v7 = vmov (!%p142_p9), 0.0   ;;  %vm218_vm0 = vcmask (!%p142_p9), 261120   ;;  %v198_v33 = vlaneseq (!%p142_p9) }
   0xe   : > { %145 = sbr.rel (%p142_p9) target bundleno = 284 (0x11c), region = 32  ;;  %v185_v1 = vld [vmem:[%s1030_s1 + $0x28] sm:$0xff] (!%p142_p9)  ;;  %v187_v4 = vld [vmem:[%s1030_s1 + $0x38] sm:$0xff] (!%p142_p9)  ;;  %v184_v6 = vld [vmem:[%s1030_s1 + $0x20] sm:$0xff] (!%p142_p9)  ;;  %307 = vmatprep.mubr.f32.mxu0 (!%p142_p9), %v731_v7  ;;  %420 = vmatprep.mubr.f32.mxu1 (!%p142_p9), %v731_v7  ;;  %p166_p10 = scmp.lt.s32.totalorder (!%p142_p9), %s583_s30, 15 }
   0xf   : > { %v609_v3 = vpack.c.bf16 (!%p142_p9), %v185_v1, %v181_v0  ;;  %v617_v8 = vpack.c.bf16 (!%p142_p9), %v187_v4, %v183_v2  ;;  %v611_v9 = vpack.c.bf16 (!%p142_p9), %v184_v6, %v180_v5  ;;  %v182_v10 = vld [vmem:[%s1030_s1 + $0x10] sm:$0xff] (!%p142_p9)  ;;  %v189_v12 = vld [vmem:[%s1030_s1 + $0x48] sm:$0xff] (!%p142_p9)  ;;  %v191_v15 = vld [vmem:[%s1030_s1 + $0x58] sm:$0xff] (!%p142_p9)  ;;  %v199_v34 = vshrl.u32 (!%p142_p9), %v198_v33, 7  ;;  %s608_s4 = sshll.u32 (!%p142_p9), %s776_s16, 12  ;;  %s732_s10 = smov (!%p142_p9), [#allocation2]  }
  0x10   : > { %v186_v11 = vld [vmem:[%s1030_s1 + $0x30] sm:$0xff] (!%p142_p9)  ;;  %v193_v14 = vld [vmem:[%s1030_s1 + $0x68] sm:$0xff] (!%p142_p9)  ;;  %v195_v16 = vld [vmem:[%s1030_s1 + $0x78] sm:$0xff] (!%p142_p9)  ;;  %s977_s7 = scalar_lea.hbm (!%p142_p9), %s1032_s3, %s608_s4  ;;  %s671_s11 = sshll.u32 (!%p142_p9), %s732_s10, 4  ;;  %s672_s11 = int_to_ptr.vmem [resolvable:$false] %s671_s11 }
  0x11   : > { %610 = vmatprep.subr.bf16.mxu0 (!%p142_p9), %v609_v3  ;;  %v619_v13 = vpack.c.bf16 (!%p142_p9), %v186_v11, %v182_v10  ;;  %618 = vmatprep.subr.bf16.mxu1 (!%p142_p9), %v617_v8  ;;  %v613_v17 = vpack.c.bf16 (!%p142_p9), %v193_v14, %v189_v12  ;;  %v621_v18 = vpack.c.bf16 (!%p142_p9), %v195_v16, %v191_v15  ;;  %v188_v19 = vld [vmem:[%s1030_s1 + $0x40] sm:$0xff] (!%p142_p9)  ;;  %v190_v21 = vld [vmem:[%s1030_s1 + $0x50] sm:$0xff] (!%p142_p9)  ;;  %v200_v35 = vsub.s32 (!%p142_p9), 0, %v199_v34  ;;  %s673_s17 = scalar_lea.vmem (!%p142_p9), %s672_s11, 8192 }
  0x12   : > { %612 = vmatpush1.bf16.msra.mxu0 (!%p142_p9), %v611_v9  ;;  %v192_v20 = vld [vmem:[%s1030_s1 + $0x60] sm:$0xff] (!%p142_p9)  ;;  %v194_v23 = vld [vmem:[%s1030_s1 + $0x70] sm:$0xff] (!%p142_p9)  ;;  %v208_v37 = vsub.s32 (!%p142_p9), 2, %v199_v34  ;;  %v204_v38 = vsub.s32 (!%p142_p9), 1, %v199_v34  ;;  %v212_v39 = vsub.s32 (!%p142_p9), 3, %v199_v34 }
  0x13   : > { %620 = vmatpush1.bf16.msra.mxu1 (!%p142_p9), %v619_v13  ;;  %v615_v22 = vpack.c.bf16 (!%p142_p9), %v192_v20, %v188_v19  ;;  %614 = vmatprep.subr.bf16.mxu0 (!%p142_p9), %v613_v17  ;;  %v623_v24 = vpack.c.bf16 (!%p142_p9), %v194_v23, %v190_v21  ;;  %v196_v36 = vld [vmem:[%s1031_s2] sm:$0xf] (!%p142_p9) }
  0x14   : > { %622 = vmatprep.subr.bf16.mxu1 (!%p142_p9), %v621_v18  ;;  %v903_v40 = vrot.slane (!%p142_p9), %v196_v36, %v200_v35  ;;  %v905_v41 = vrot.slane (!%p142_p9), %v196_v36, %v208_v37  ;;  %v907_v42 = vrot.slane (!%p142_p9), %v196_v36, %v204_v38  ;;  %v909_v43 = vrot.slane (!%p142_p9), %v196_v36, %v212_v39 }
  0x15   : > { %s1040_s30 = smov (!%p166_p10, %s583_s30), 15 }
  0x16   : > { %s584_s19 = sshll.u32 %s1040_s30, 3  ;;  %616 = vmatpush1.bf16.msra.mxu0 %v615_v22  ;;  %s162_s30 = sand.u32 1, %s721_s13  }
  0x17   : > { %s857_s25 = scalar_lea.vmem %s1029_s0, %s584_s19  ;;  %624 = vmatpush1.bf16.msra.mxu1 %v623_v24  ;;  %s582_s28 = sshll.u32 %s162_s30, 8 }
  0x18   : > { %v172_v25 = vld [vmem:[%s857_s25] sm:$0xff]  ;;  %v173_v26 = vld [vmem:[%s857_s25 + $0x8] sm:$0xff]  ;;  %v174_v27 = vld [vmem:[%s857_s25 + $0x10] sm:$0xff]  ;;  %s914_s29 = scalar_lea.vmem [#allocation2], %s582_s28  ;;  %s988_s8 = scalar_lea.sflag [#allocation3], %s162_s30 }
  0x19   : > { %585 = vmatmul.mubr.msk.f32.vlgmr.msra.gmra.mrb[0].mxu0 %vm218_vm0, %v172_v25  ;;  %v175_v28 = vld [vmem:[%s857_s25 + $0x18] sm:$0xff]  ;;  %v176_v29 = vld [vmem:[%s857_s25 + $0x20] sm:$0xff]  ;;  %v177_v30 = vld [vmem:[%s857_s25 + $0x28] sm:$0xff]  ;;  %s516_s5 = sshll.u32 %s914_s29, 4  ;;  %s979_s5 = int_to_ptr.vmem [resolvable:$true] %s516_s5 }
  0x1a   : > { %593 = vmatmul.mubr.msk.f32.vlgmr.msra.gmra.mrb[0].mxu1 %vm218_vm0, %v172_v25  ;;  %313 = vmatprep.mubr.f32.mxu0 %v731_v7  ;;  %v178_v31 = vld [vmem:[%s857_s25 + $0x30] sm:$0xff]  ;;  %v179_v32 = vld [vmem:[%s857_s25 + $0x38] sm:$0xff]  ;;  %s667_s9 = scalar_lea.vmem %s979_s5, 4096  ;;  %p674_p0 = scmp.lt.s32.totalorder %s979_s5, %s672_s11 }
  0x1b   : > { %426 = vmatprep.mubr.f32.mxu1 %v731_v7  ;;  %p668_p11 = scmp.ne.s32.totalorder %s979_s5, %s667_s9  ;;  %p675_p1 = scmp.lt.s32.totalorder %s673_s17, %s667_s9 }
  0x1d   : > { %586 = vmatmul.mubr.msk.f32.gmra.mrb[2].mxu0 %vm218_vm0, %v173_v26  ;;  %p669_p12 = pnand %p668_p11, %p793_p5  ;;  %p676_p2 = por %p675_p1, %p674_p0 }
  0x1e   : > { %594 = vmatmul.mubr.msk.f32.gmra.mrb[2].mxu1 %vm218_vm0, %v173_v26  ;;  %319 = vmatprep.mubr.f32.mxu0 %v731_v7 }
  0x1f   : > { %432 = vmatprep.mubr.f32.mxu1 %v731_v7  ;;  %p670_p13 = pneg %p669_p12 }
  0x21   : > { %587 = vmatmul.mubr.msk.f32.gmra.mrb[4].mxu0 %vm218_vm0, %v174_v27  ;;  %p677_p3 = pnand %p676_p2, %p670_p13 }
  0x22   : > { %595 = vmatmul.mubr.msk.f32.gmra.mrb[4].mxu1 %vm218_vm0, %v174_v27  ;;  %325 = vmatprep.mubr.f32.mxu0 %v731_v7 }
  0x23   : > { %438 = vmatprep.mubr.f32.mxu1 %v731_v7 }
  0x25   : > { %588 = vmatmul.mubr.msk.f32.gmra.mrb[6].mxu0 %vm218_vm0, %v175_v28 }
  0x26   : > { %596 = vmatmul.mubr.msk.f32.gmra.mrb[6].mxu1 %vm218_vm0, %v175_v28  ;;  %331 = vmatprep.mubr.f32.mxu0 %v731_v7 }
  0x27   : > { %444 = vmatprep.mubr.f32.mxu1 %v731_v7 }
  0x29   : > { %589 = vmatmul.mubr.msk.f32.gmra.mrb[8].mxu0 %vm218_vm0, %v176_v29 }
  0x2a   : > { %597 = vmatmul.mubr.msk.f32.gmra.mrb[8].mxu1 %vm218_vm0, %v176_v29  ;;  %337 = vmatprep.mubr.f32.mxu0 %v731_v7 }
  0x2b   : > { %450 = vmatprep.mubr.f32.mxu1 %v731_v7 }
  0x2d   : > { %590 = vmatmul.mubr.msk.f32.gmra.mrb[10].mxu0 %vm218_vm0, %v177_v30 }
  0x2e   : > { %598 = vmatmul.mubr.msk.f32.gmra.mrb[10].mxu1 %vm218_vm0, %v177_v30  ;;  %343 = vmatprep.mubr.f32.mxu0 %v731_v7 }
  0x2f   : > { %456 = vmatprep.mubr.f32.mxu1 %v731_v7 }
  0x31   : > { %591 = vmatmul.mubr.msk.f32.gmra.mrb[12].mxu0 %vm218_vm0, %v178_v31 }
  0x32   : > { %599 = vmatmul.mubr.msk.f32.gmra.mrb[12].mxu1 %vm218_vm0, %v178_v31  ;;  %349 = vmatprep.mubr.f32.mxu0 %v731_v7 }
  0x33   : > { %462 = vmatprep.mubr.f32.mxu1 %v731_v7 }
  0x35   : > { %592 = vmatmul.mubr.msk.f32.gmra.mrb[14].mxu0 %vm218_vm0, %v179_v32 }
  0x36   : > { %600 = vmatmul.mubr.msk.f32.gmra.mrb[14].mxu1 %vm218_vm0, %v179_v32 }
  0xec   : > { %v309_v44 = vpop.f32.mrb[0].mxu0 }
  0xed   : > { %v310_v45 = vadd.f32 %v309_v44, %v903_v40  ;;  %v422_v46 = vpop.f32.mrb[0].mxu1  ;;  %v311_v47 = vpop.f32.mrb[1].mxu0 }
  0xee   : > { %v423_v48 = vadd.f32 %v422_v46, %v905_v41  ;;  %v312_v49 = vadd.f32 %v311_v47, %v907_v42  ;;  %v424_v50 = vpop.f32.mrb[1].mxu1 }
  0xef   : > { %469 = vst [vmem:[%s914_s29] sm:$0xff] %v310_v45  ;;  %v425_v51 = vadd.f32 %v424_v50, %v909_v43 }
  0xf0   : > { %471 = vst [vmem:[%s914_s29 + $0x10] sm:$0xff] %v423_v48  ;;  %470 = vst [vmem:[%s914_s29 + $0x8] sm:$0xff] %v312_v49  ;;  %v315_v52 = vpop.f32.mrb[2].mxu0 }
  0xf1   : > { %472 = vst [vmem:[%s914_s29 + $0x18] sm:$0xff] %v425_v51  ;;  %v316_v53 = vadd.f32 %v315_v52, %v903_v40  ;;  %v428_v54 = vpop.f32.mrb[2].mxu1  ;;  %v317_v55 = vpop.f32.mrb[3].mxu0 }
  0xf2   : > { %v429_v56 = vadd.f32 %v428_v54, %v905_v41  ;;  %v318_v57 = vadd.f32 %v317_v55, %v907_v42  ;;  %v430_v58 = vpop.f32.mrb[3].mxu1 }
  0xf3   : > { %473 = vst [vmem:[%s914_s29 + $0x20] sm:$0xff] %v316_v53  ;;  %v431_v59 = vadd.f32 %v430_v58, %v909_v43 }
  0xf4   : > { %475 = vst [vmem:[%s914_s29 + $0x30] sm:$0xff] %v429_v56  ;;  %474 = vst [vmem:[%s914_s29 + $0x28] sm:$0xff] %v318_v57  ;;  %v321_v60 = vpop.f32.mrb[4].mxu0 }
  0xf5   : > { %476 = vst [vmem:[%s914_s29 + $0x38] sm:$0xff] %v431_v59  ;;  %v322_v61 = vadd.f32 %v321_v60, %v903_v40  ;;  %v434_v62 = vpop.f32.mrb[4].mxu1  ;;  %v323_v63 = vpop.f32.mrb[5].mxu0 }
  0xf6   : > { %v435_v0 = vadd.f32 %v434_v62, %v905_v41  ;;  %v324_v1 = vadd.f32 %v323_v63, %v907_v42  ;;  %v436_v2 = vpop.f32.mrb[5].mxu1 }
  0xf7   : > { %477 = vst [vmem:[%s914_s29 + $0x40] sm:$0xff] %v322_v61  ;;  %v437_v3 = vadd.f32 %v436_v2, %v909_v43 }
  0xf8   : > { %479 = vst [vmem:[%s914_s29 + $0x50] sm:$0xff] %v435_v0  ;;  %478 = vst [vmem:[%s914_s29 + $0x48] sm:$0xff] %v324_v1  ;;  %v327_v4 = vpop.f32.mrb[6].mxu0 }
  0xf9   : > { %480 = vst [vmem:[%s914_s29 + $0x58] sm:$0xff] %v437_v3  ;;  %v328_v5 = vadd.f32 %v327_v4, %v903_v40  ;;  %v440_v6 = vpop.f32.mrb[6].mxu1  ;;  %v329_v7 = vpop.f32.mrb[7].mxu0 }
  0xfa   : > { %v441_v8 = vadd.f32 %v440_v6, %v905_v41  ;;  %v330_v9 = vadd.f32 %v329_v7, %v907_v42  ;;  %v442_v10 = vpop.f32.mrb[7].mxu1 }
  0xfb   : > { %481 = vst [vmem:[%s914_s29 + $0x60] sm:$0xff] %v328_v5  ;;  %v443_v11 = vadd.f32 %v442_v10, %v909_v43 }
  0xfc   : > { %483 = vst [vmem:[%s914_s29 + $0x70] sm:$0xff] %v441_v8  ;;  %482 = vst [vmem:[%s914_s29 + $0x68] sm:$0xff] %v330_v9  ;;  %v333_v12 = vpop.f32.mrb[8].mxu0 }
  0xfd   : > { %484 = vst [vmem:[%s914_s29 + $0x78] sm:$0xff] %v443_v11  ;;  %v334_v13 = vadd.f32 %v333_v12, %v903_v40  ;;  %v446_v14 = vpop.f32.mrb[8].mxu1  ;;  %v335_v15 = vpop.f32.mrb[9].mxu0 }
  0xfe   : > { %v447_v16 = vadd.f32 %v446_v14, %v905_v41  ;;  %v336_v17 = vadd.f32 %v335_v15, %v907_v42  ;;  %v448_v18 = vpop.f32.mrb[9].mxu1 }
  0xff   : > { %485 = vst [vmem:[%s914_s29 + $0x80] sm:$0xff] %v334_v13  ;;  %v449_v19 = vadd.f32 %v448_v18, %v909_v43 }
 0x100   : > { %487 = vst [vmem:[%s914_s29 + $0x90] sm:$0xff] %v447_v16  ;;  %486 = vst [vmem:[%s914_s29 + $0x88] sm:$0xff] %v336_v17  ;;  %v339_v20 = vpop.f32.mrb[10].mxu0 }
 0x101   : > { %488 = vst [vmem:[%s914_s29 + $0x98] sm:$0xff] %v449_v19  ;;  %v340_v21 = vadd.f32 %v339_v20, %v903_v40  ;;  %v452_v22 = vpop.f32.mrb[10].mxu1  ;;  %v341_v23 = vpop.f32.mrb[11].mxu0 }
 0x102   : > { %v453_v24 = vadd.f32 %v452_v22, %v905_v41  ;;  %v342_v25 = vadd.f32 %v341_v23, %v907_v42  ;;  %v454_v26 = vpop.f32.mrb[11].mxu1 }
 0x103   : > { %489 = vst [vmem:[%s914_s29 + $0xa0] sm:$0xff] %v340_v21  ;;  %v455_v27 = vadd.f32 %v454_v26, %v909_v43 }
 0x104   : > { %491 = vst [vmem:[%s914_s29 + $0xb0] sm:$0xff] %v453_v24  ;;  %490 = vst [vmem:[%s914_s29 + $0xa8] sm:$0xff] %v342_v25  ;;  %v345_v28 = vpop.f32.mrb[12].mxu0 }
 0x105   : > { %492 = vst [vmem:[%s914_s29 + $0xb8] sm:$0xff] %v455_v27  ;;  %v346_v29 = vadd.f32 %v345_v28, %v903_v40  ;;  %v458_v30 = vpop.f32.mrb[12].mxu1  ;;  %v347_v31 = vpop.f32.mrb[13].mxu0 }
 0x106   : > { %v459_v32 = vadd.f32 %v458_v30, %v905_v41  ;;  %v348_v33 = vadd.f32 %v347_v31, %v907_v42  ;;  %v460_v34 = vpop.f32.mrb[13].mxu1 }
 0x107   : > { %493 = vst [vmem:[%s914_s29 + $0xc0] sm:$0xff] %v346_v29  ;;  %v461_v35 = vadd.f32 %v460_v34, %v909_v43 }
 0x108   : > { %495 = vst [vmem:[%s914_s29 + $0xd0] sm:$0xff] %v459_v32  ;;  %494 = vst [vmem:[%s914_s29 + $0xc8] sm:$0xff] %v348_v33  ;;  %v351_v36 = vpop.f32.mrb[14].mxu0 }
 0x109   : > { %496 = vst [vmem:[%s914_s29 + $0xd8] sm:$0xff] %v461_v35  ;;  %v352_v37 = vadd.f32 %v351_v36, %v903_v40  ;;  %v464_v38 = vpop.f32.mrb[14].mxu1  ;;  %v353_v39 = vpop.f32.mrb[15].mxu0 }
 0x10a   : > { %v465_v44 = vadd.f32 %v464_v38, %v905_v41  ;;  %v354_v45 = vadd.f32 %v353_v39, %v907_v42  ;;  %v466_v46 = vpop.f32.mrb[15].mxu1 }
 0x10b   : > { %497 = vst [vmem:[%s914_s29 + $0xe0] sm:$0xff] %v352_v37  ;;  %v467_v40 = vadd.f32 %v466_v46, %v909_v43 }
 0x10c   : > { %499 = vst [vmem:[%s914_s29 + $0xf0] sm:$0xff] %v465_v44  ;;  %498 = vst [vmem:[%s914_s29 + $0xe8] sm:$0xff] %v354_v45 }
 0x10d   : > { %500 = vst [vmem:[%s914_s29 + $0xf8] sm:$0xff] %v467_v40 }
 0x10e   : > { %680 = shalt.err (!%p677_p3)
}
 0x10f   : > { %s681_s19 = scalar_lea.hbm %s977_s7, 4096  ;;  %s685_s25 = scalar_lea.hbm %s1032_s3, 8192 }
 0x110   : > { %p682_p4 = scmp.ne.s32.totalorder %s977_s7, %s681_s19  ;;  %p686_p9 = scmp.lt.u32.totalorder %s977_s7, %s1032_s3 }
 0x111   : > { %p687_p10 = scmp.lt.u32.totalorder %s685_s25, %s681_s19  ;;  %p689_p12 = scmp.lt.u32.totalorder %s681_s19, %s977_s7 }
 0x112   : > { %p683_p7 = pnand %p682_p4, %p793_p5 }
 0x113   : > { %p688_p11 = por %p687_p10, %p686_p9 }
 0x114   : > { %p684_p8 = pneg %p683_p7 }
 0x115   : > { %p690_p13 = por %p689_p12, %p688_p11 }
 0x117   : > { %p691_p0 = pnand %p690_p13, %p684_p8 }
 0x119   : > { %694 = shalt.err (!%p691_p0)
}
 0x11a   : > { %s733_s27 = smov 512   ;;  %s734_s28 = smov 32  }
 0x11b   : > { %625 = dma.vmem_to_hbm [thread:$0]  (%p793_p5), %s979_s5, 4096, %s977_s7, %s988_s8, %s733_s27, %s733_s27, %s734_s28  }
 0x11c PF: > { %p631_p1 = scmp.ge.s32.totalorder %s729_s15, 2  ;;  %s531_s29 = sand.u32 1, %s717_s12  }
 0x11d   : > { %s532_s4 = scalar_lea.sflag [#allocation3], %s531_s29 }
 0x11e   : > { %p628_p2 = pnand %p631_p1, %p797_p6 }
 0x120   : > { %712 = dma.done.wait (!%p628_p2), %s532_s4, 4096  }
 0x121   : > { %714 = vsyncadd (!%p628_p2), %s532_s4, 4294963200  ;;  %p13_p3 = scmp.ge.s32.totalorder %s780_s18, 4   ;;  %s1035_s12 = smov %s721_s13 }
 0x122   : > { %s1036_s13 = smov %s725_s14  ;;  %s1037_s14 = smov %s791_s21 }
 0x123   : > { %s1038_s15 = smov %s780_s18  ;;  %15 = sbr.rel (!%p13_p3) target bundleno = 3 (0x3), region = 67 }
 0x12a   :  { %537 = vsyncpa [#allocation3], 1 }
 0x12b   :  { %539 = vsyncpa [#allocation3 + $0x1], 1 }

</bundles_post_ra>
